<compile_context>
chip_gen: v6e
topology: v6e:2x2x1
jax: 0.10.0
libtpu: 0.0.40
codegen_flags: <defaults>
</compile_context>

<pallas_src>
import math

import jax
import jax.numpy as jnp
from jax.experimental import pallas as pl
from jax.experimental.pallas import tpu as pltpu

LANE = 128  # TPU lane width; the feature dim is padded to a multiple of this.


def gcn_kernel(adj_ref, w1_ref, b1_ref, w2_ref, b2_ref, out_ref):
    # x == identity in GCN.forward(), so layer-1 "support" is just W1.
    adj = adj_ref[...]                                              # (V, V) f32
    # Layer 1: h1 = relu(adj @ W1 + b1)   (f32 throughout, fused epilogue)
    h1 = jnp.dot(adj, w1_ref[...], preferred_element_type=jnp.float32)
    h1 = jnp.maximum(h1 + b1_ref[...], 0.0)                         # (V, E_pad)
    # Dropout(p=0.3) -> identity in eval mode.
    # Layer 2: out = adj @ (h1 @ W2) + b2
    s2 = jnp.dot(h1, w2_ref[...], preferred_element_type=jnp.float32)
    out_ref[...] = jnp.dot(adj, s2, preferred_element_type=jnp.float32) + b2_ref[...]


def make_padded_params(w1, b1, w2, b2):
    """One-time (init) preparation: pad the feature/lane dim E -> E_pad (mult of 128).

    Padded W1/b1 columns are zero, ReLU(0)=0 keeps padded h1 columns zero, and
    padded W2 rows/columns are zero, so the padded output columns are exactly
    b2_pad (= 0), making a slice back to E exact if ever needed.
    """
    V, E = w1.shape
    E_pad = ((E + LANE - 1) // LANE) * LANE
    w1_p = jnp.zeros((V, E_pad), jnp.float32).at[:, :E].set(w1.astype(jnp.float32))
    w2_p = jnp.zeros((E_pad, E_pad), jnp.float32).at[:E, :E].set(w2.astype(jnp.float32))
    b1_p = jnp.zeros((1, E_pad), jnp.float32).at[:, :E].set(b1.astype(jnp.float32)[None, :])
    b2_p = jnp.zeros((1, E_pad), jnp.float32).at[:, :E].set(b2.astype(jnp.float32)[None, :])
    return w1_p, b1_p, w2_p, b2_p


def _gcn_cost_estimate(V, E_pad):
    flops = 2 * V * V * E_pad + 2 * V * E_pad * E_pad + 2 * V * V * E_pad
    bytes_accessed = 4 * (V * V + V * E_pad + E_pad + E_pad * E_pad + E_pad + V * E_pad)
    return pl.CostEstimate(flops=flops, transcendentals=0,
                           bytes_accessed=bytes_accessed)


@jax.jit
def gcn_forward_padded(adj, w1_p, b1_p, w2_p, b2_p):
    """Hot-path fused GCN forward on pre-padded f32 params.

    adj: (V, V) f32, w1_p: (V, E_pad), b1_p: (1, E_pad), w2_p: (E_pad, E_pad),
    b2_p: (1, E_pad).  Returns the lane-dense (V, E_pad) embedding; downstream
    consumers should use the padded layout directly (cols >= E are all zero).
    """
    V = adj.shape[0]
    E_pad = w1_p.shape[1]
    vmem = pl.BlockSpec(memory_space=pltpu.MemorySpace.VMEM)
    return pl.pallas_call(
        gcn_kernel,
        out_shape=jax.ShapeDtypeStruct((V, E_pad), jnp.float32),
        in_specs=[vmem] * 5,
        out_specs=vmem,
        cost_estimate=_gcn_cost_estimate(V, E_pad),
    )(adj, w1_p, b1_p, w2_p, b2_p)


def normalize_rows(mx):
    """Row-normalize (matches GCN.normalize)."""
    rowsum = mx.sum(axis=1)
    r_inv = jnp.where(rowsum == 0.0, 0.0, 1.0 / rowsum)
    return mx * r_inv[:, None]


def reference_forward_f32(adj, w1, b1, w2, b2):
    """Exact-semantics f32 reference (x = identity, dropout in eval mode)."""
    h = jnp.maximum(adj @ w1 + b1, 0.0)
    return adj @ (h @ w2) + b2


if __name__ == "__main__":
    voc_size = 16   # number of graph nodes / vocabulary size
    emb_dim = 32    # embedding dimension

    key = jax.random.PRNGKey(0)
    k_adj, k_w1, k_b1, k_w2, k_b2 = jax.random.split(key, 5)

    # Synthetic symmetric binary adjacency, then add self-loops and row-normalize.
    raw = (jax.random.uniform(k_adj, (voc_size, voc_size)) > 0.7).astype(jnp.float32)
    raw = jnp.maximum(raw, raw.T)
    adj = normalize_rows(raw + jnp.eye(voc_size, dtype=jnp.float32))

    # GraphConvolution reset_parameters: uniform(-1/sqrt(out), 1/sqrt(out))
    stdv1 = 1.0 / math.sqrt(emb_dim)
    w1 = jax.random.uniform(k_w1, (voc_size, emb_dim), minval=-stdv1, maxval=stdv1)
    b1 = jax.random.uniform(k_b1, (emb_dim,), minval=-stdv1, maxval=stdv1)
    stdv2 = 1.0 / math.sqrt(emb_dim)
    w2 = jax.random.uniform(k_w2, (emb_dim, emb_dim), minval=-stdv2, maxval=stdv2)
    b2 = jax.random.uniform(k_b2, (emb_dim,), minval=-stdv2, maxval=stdv2)

    # Init-time (one-off) parameter preparation: padding/cast hoisted out of the
    # hot path.
    w1_p, b1_p, w2_p, b2_p = make_padded_params(w1, b1, w2, b2)
    adj_f32 = adj.astype(jnp.float32)

    # Hot path: single jitted pallas_call, lane-dense padded output.
    out_pad = gcn_forward_padded(adj_f32, w1_p, b1_p, w2_p, b2_p)
    out_pad = jax.block_until_ready(out_pad)
    assert out_pad.shape == (voc_size, ((emb_dim + LANE - 1) // LANE) * LANE)

    # Verification only (not hot path): slice back to E and compare against the
    # exact f32 module semantics.  All-f32 kernel => tight tolerance.
    out = out_pad[:, :emb_dim]
    ref_f32 = reference_forward_f32(adj, w1, b1, w2, b2)
    assert jnp.allclose(out, ref_f32, atol=1e-5, rtol=1e-5), (
        float(jnp.max(jnp.abs(out - ref_f32))))
    # Padded columns must be exactly zero (zero W2 cols + zero b2 padding).
    assert jnp.all(out_pad[:, emb_dim:] == 0.0)

    print("KERNEL_OK")
</pallas_src>

<mosaic_0001>
module attributes {stable_mosaic.version = 11 : i64} {
  func.func @gcn_kernel(%arg0: memref<16x16xf32, #tpu.memory_space<vmem>>, %arg1: memref<16x128xf32, #tpu.memory_space<vmem>>, %arg2: memref<1x128xf32, #tpu.memory_space<vmem>>, %arg3: memref<128x128xf32, #tpu.memory_space<vmem>>, %arg4: memref<1x128xf32, #tpu.memory_space<vmem>>, %arg5: memref<16x128xf32, #tpu.memory_space<vmem>>) attributes {dimension_semantics = [], scalar_prefetch = 0 : i64, scratch_operands = 0 : i64, tpu.core_type = #tpu.core_type<tc>} {
    %c0 = arith.constant 0 : index
    %c0_0 = arith.constant 0 : index
    %0 = vector.load %arg0[%c0, %c0_0] : memref<16x16xf32, #tpu.memory_space<vmem>>, vector<16x16xf32>
    %c0_1 = arith.constant 0 : index
    %c0_2 = arith.constant 0 : index
    %1 = vector.load %arg1[%c0_1, %c0_2] : memref<16x128xf32, #tpu.memory_space<vmem>>, vector<16x128xf32>
    %cst = arith.constant dense<0.000000e+00> : vector<16x128xf32>
    %2 = tpu.matmul %0, %1, %cst {dimension_numbers = #tpu.dot_dimension_numbers<[1], [0], [0], [1], [0, 0, 1, 1], [], []>} : vector<16x16xf32>, vector<16x128xf32>, vector<16x128xf32> -> vector<16x128xf32>
    %c0_3 = arith.constant 0 : index
    %c0_4 = arith.constant 0 : index
    %3 = vector.load %arg2[%c0_3, %c0_4] : memref<1x128xf32, #tpu.memory_space<vmem>>, vector<1x128xf32>
    %4 = vector.broadcast %3 : vector<1x128xf32> to vector<16x128xf32>
    %5 = arith.addf %2, %4 : vector<16x128xf32>
    %cst_5 = arith.constant 0.000000e+00 : f32
    %6 = vector.broadcast %cst_5 : f32 to vector<16x128xf32>
    %7 = arith.maximumf %5, %6 : vector<16x128xf32>
    %c0_6 = arith.constant 0 : index
    %c0_7 = arith.constant 0 : index
    %8 = vector.load %arg3[%c0_6, %c0_7] : memref<128x128xf32, #tpu.memory_space<vmem>>, vector<128x128xf32>
    %cst_8 = arith.constant dense<0.000000e+00> : vector<16x128xf32>
    %9 = tpu.matmul %7, %8, %cst_8 {dimension_numbers = #tpu.dot_dimension_numbers<[1], [0], [0], [1], [0, 0, 1, 1], [], []>} : vector<16x128xf32>, vector<128x128xf32>, vector<16x128xf32> -> vector<16x128xf32>
    %cst_9 = arith.constant dense<0.000000e+00> : vector<16x128xf32>
    %10 = tpu.matmul %0, %9, %cst_9 {dimension_numbers = #tpu.dot_dimension_numbers<[1], [0], [0], [1], [0, 0, 1, 1], [], []>} : vector<16x16xf32>, vector<16x128xf32>, vector<16x128xf32> -> vector<16x128xf32>
    %c0_10 = arith.constant 0 : index
    %c0_11 = arith.constant 0 : index
    %11 = vector.load %arg4[%c0_10, %c0_11] : memref<1x128xf32, #tpu.memory_space<vmem>>, vector<1x128xf32>
    %12 = vector.broadcast %11 : vector<1x128xf32> to vector<16x128xf32>
    %13 = arith.addf %10, %12 : vector<16x128xf32>
    %c0_12 = arith.constant 0 : index
    %c0_13 = arith.constant 0 : index
    %14 = vector.load %arg5[%c0_12, %c0_13] : memref<16x128xf32, #tpu.memory_space<vmem>>, vector<16x128xf32>
    tpu.vector_store %arg5[%c0_12, %c0_13], %13 {strides = array<i32>} : memref<16x128xf32, #tpu.memory_space<vmem>>, vector<16x128xf32>,
    return
  }
}

</mosaic_0001>

<bundles_post_ra>
// kernel: gcn_forward_padded.1
= control target key start
LH: loop header
LB: loop body
LE: loop exit
PB: predicated region body
PF: predicated region fallthrough
CT: control target
= control target key end

     0   :  { %10 = vsyncpa [#allocation3], 0  ;;  %s597_s0 = inlined_call_operand.hbm [shape: f32[16,16], index: 0, kind: input, shape index: {}]   ;;  %s598_s1 = inlined_call_operand.hbm [shape: f32[16,128], index: 1, kind: input, shape index: {}]   ;;  %s599_s2 = inlined_call_operand.vmem [shape: f32[1,128], index: 2, kind: input, shape index: {}]   ;;  %s600_s3 = inlined_call_operand.hbm [shape: f32[128,128], index: 3, kind: input, shape index: {}]   ;;  %s601_s4 = inlined_call_operand.vmem [shape: f32[1,128], index: 4, kind: input, shape index: {}]   ;;  %s602_s5 = inlined_call_operand.hbm [shape: f32[16,128], index: 5, kind: output, shape index: {}]  }
   0x1   :  { %11 = vsyncpa [#allocation6], 0 }
   0x2   :  { %12 = vsyncpa [#allocation4], 0  ;;  %s523_s18 = smov [#allocation5]   ;;  %s524_s20 = smov [#allocation2]  }
   0x3   :  { %s30_s19 = sshll.u32 %s523_s18, 4  ;;  %s18_s21 = sshll.u32 %s524_s20, 4  ;;  %s31_s19 = int_to_ptr.vmem [resolvable:$true] %s30_s19  ;;  %s19_s21 = int_to_ptr.vmem [resolvable:$true] %s18_s21 }
   0x4   :  { %s445_s22 = scalar_lea.vmem %s31_s19, 256  ;;  %p450_p1 = scmp.lt.s32.totalorder %s31_s19, %s31_s19 }
   0x5   :  { %p446_p0 = scmp.ne.s32.totalorder %s31_s19, %s445_s22  ;;  %p451_p2 = scmp.lt.s32.totalorder %s445_s22, %s445_s22 }
   0x7   :  { %p452_p3 = por %p451_p2, %p450_p1 }
   0x9   :  { %p453_p4 = pnand %p452_p3, %p446_p0 }
   0xb   :  { %456 = shalt.err (!%p453_p4)
}
   0xc   :  { %s525_s23 = smov 128   ;;  %s526_s24 = smov 8  }
   0xd   :  { %36 = dma.hbm_to_vmem [thread:$0]  %s598_s1, 256, %s31_s19, [#allocation6], %s525_s23, %s525_s23, %s526_s24  }
   0xe   :  { %s465_s27 = scalar_lea.vmem %s19_s21, 256  ;;  %p470_p6 = scmp.lt.s32.totalorder %s19_s21, %s19_s21 }
   0xf   :  { %p466_p5 = scmp.ne.s32.totalorder %s19_s21, %s465_s27  ;;  %p471_p7 = scmp.lt.s32.totalorder %s465_s27, %s465_s27 }
  0x11   :  { %p472_p8 = por %p471_p7, %p470_p6 }
  0x13   :  { %p473_p9 = pnand %p472_p8, %p466_p5 }
  0x15   :  { %476 = shalt.err (!%p473_p9)
}
  0x16   :  { %24 = dma.hbm_to_vmem [thread:$0]  %s597_s0, 256, %s19_s21, [#allocation3], %s525_s23, %s525_s23, %s526_s24  }
  0x17   :  { %s527_s30 = smov [#allocation7]  }
  0x18   :  { %s44_s6 = sshll.u32 %s527_s30, 4  ;;  %s45_s6 = int_to_ptr.vmem [resolvable:$true] %s44_s6 }
  0x19   :  { %s485_s7 = scalar_lea.vmem %s45_s6, 2048  ;;  %p490_p11 = scmp.lt.s32.totalorder %s45_s6, %s45_s6 }
  0x1a   :  { %p486_p10 = scmp.ne.s32.totalorder %s45_s6, %s485_s7  ;;  %p491_p12 = scmp.lt.s32.totalorder %s485_s7, %s485_s7 }
  0x1c   :  { %p492_p13 = por %p491_p12, %p490_p11 }
  0x1e   :  { %p493_p0 = pnand %p492_p13, %p486_p10 }
  0x20   :  { %496 = shalt.err (!%p493_p0)
}
  0x21   :  { %50 = dma.hbm_to_vmem [thread:$0]  %s600_s3, 2048, %s45_s6, [#allocation6], %s525_s23, %s525_s23, %s526_s24  }
  0x22   :  { %517 = dma.done.wait [#allocation3], 256  }
  0x23   :  { %518 = vsyncadd [#allocation3], 4294967040 }
  0x24   :  { %519 = dma.done.wait [#allocation6], 2304  }
  0x25   :  { %520 = vsyncadd [#allocation6], 4294964992  ;;  %vm73_vm0 = vcmask 130048   ;;  %v65_v0 = vld [vmem:[#allocation5 + $0x8] sm:$0xff]  ;;  %v64_v1 = vld [vmem:[#allocation5] sm:$0xff] }
  0x26   :  { %v62_v2 = vld [vmem:[#allocation2] sm:$0xff]  ;;  %382 = vmatprep.subr.mxu0 %v65_v0  ;;  %v172_v3 = vld [vmem:[#allocation7 + $0x78] sm:$0xff]  ;;  %v171_v4 = vld [vmem:[#allocation7 + $0x70] sm:$0xff] }
  0x27   :  { %386 = vmatprep.mubr.msk.f32.mxu0 %vm73_vm0, %v62_v2  ;;  %383 = vmatpush3.msra.mxu0 %v65_v0  ;;  %v578_v5 = vld [vmem:[#allocation2 + $0x8] sm:$0xff]  ;;  %v169_v7 = vld [vmem:[#allocation7 + $0x60] sm:$0xff]  ;;  %v168_v8 = vld [vmem:[#allocation7 + $0x58] sm:$0xff] }
  0x28   :  { %389 = vmatprep.subr.mxu1 %v172_v3  ;;  %384 = vmatprep.subr.mxu0 %v64_v1  ;;  %v170_v6 = vld [vmem:[#allocation7 + $0x68] sm:$0xff]  ;;  %v167_v9 = vld [vmem:[#allocation7 + $0x50] sm:$0xff]  ;;  %v165_v11 = vld [vmem:[#allocation7 + $0x40] sm:$0xff] }
  0x29   :  { %390 = vmatpush3.msra.mxu1 %v172_v3  ;;  %385 = vmatpush3.msra.mxu0 %v64_v1  ;;  %v166_v10 = vld [vmem:[#allocation7 + $0x48] sm:$0xff]  ;;  %v164_v12 = vld [vmem:[#allocation7 + $0x38] sm:$0xff]  ;;  %v163_v13 = vld [vmem:[#allocation7 + $0x30] sm:$0xff] }
  0x2a   :  { %391 = vmatprep.subr.mxu1 %v171_v4  ;;  %387 = vmatmul.mubr.msk.f32.vlgmr.msra.gmra.mxu0 %vm73_vm0, %v578_v5  ;;  %v162_v14 = vld [vmem:[#allocation7 + $0x28] sm:$0xff]  ;;  %v161_v15 = vld [vmem:[#allocation7 + $0x20] sm:$0xff]  ;;  %v160_v16 = vld [vmem:[#allocation7 + $0x18] sm:$0xff] }
  0x2b   :  { %392 = vmatpush3.msra.mxu1 %v171_v4  ;;  %428 = vmatprep.mubr.msk.f32.mxu0 %vm73_vm0, %v62_v2  ;;  %v159_v17 = vld [vmem:[#allocation7 + $0x10] sm:$0xff]  ;;  %v158_v18 = vld [vmem:[#allocation7 + $0x8] sm:$0xff]  ;;  %v157_v19 = vld [vmem:[#allocation7] sm:$0xff] }
  0x2c   :  { %393 = vmatprep.subr.mxu1 %v170_v6  ;;  %v350_v20 = vld [vmem:[%s599_s2] ss:$0 sm:$0xff]  ;;  %s528_s2 = smov [#allocation8]  }
  0x2d   :  { %394 = vmatpush3.msra.mxu1 %v170_v6  ;;  %v353_v29 = vld [vmem:[%s601_s4] ss:$0 sm:$0xff]  ;;  %s337_s11 = sshll.u32 %s528_s2, 4  ;;  %s338_s11 = int_to_ptr.vmem [resolvable:$true] %s337_s11 }
  0x2e   :  { %395 = vmatprep.subr.mxu1 %v169_v7  ;;  %s497_s12 = scalar_lea.vmem %s338_s11, 256  ;;  %p502_p2 = scmp.lt.s32.totalorder %s338_s11, %s338_s11 }
  0x2f   :  { %396 = vmatpush3.msra.mxu1 %v169_v7  ;;  %p498_p1 = scmp.ne.s32.totalorder %s338_s11, %s497_s12  ;;  %p503_p3 = scmp.lt.s32.totalorder %s497_s12, %s497_s12 }
  0x30   :  { %397 = vmatprep.subr.mxu1 %v168_v8 }
  0x31   :  { %398 = vmatpush3.msra.mxu1 %v168_v8  ;;  %p504_p4 = por %p503_p3, %p502_p2 }
  0x32   :  { %399 = vmatprep.subr.mxu1 %v167_v9 }
  0x33   :  { %400 = vmatpush3.msra.mxu1 %v167_v9  ;;  %p505_p5 = pnand %p504_p4, %p498_p1 }
  0x34   :  { %401 = vmatprep.subr.mxu1 %v166_v10 }
  0x35   :  { %402 = vmatpush3.msra.mxu1 %v166_v10 }
  0x36   :  { %403 = vmatprep.subr.mxu1 %v165_v11 }
  0x37   :  { %404 = vmatpush3.msra.mxu1 %v165_v11 }
  0x38   :  { %405 = vmatprep.subr.mxu1 %v164_v12 }
  0x39   :  { %406 = vmatpush3.msra.mxu1 %v164_v12 }
  0x3a   :  { %407 = vmatprep.subr.mxu1 %v163_v13 }
  0x3b   :  { %408 = vmatpush3.msra.mxu1 %v163_v13 }
  0x3c   :  { %409 = vmatprep.subr.mxu1 %v162_v14 }
  0x3d   :  { %410 = vmatpush3.msra.mxu1 %v162_v14 }
  0x3e   :  { %411 = vmatprep.subr.mxu1 %v161_v15 }
  0x3f   :  { %412 = vmatpush3.msra.mxu1 %v161_v15 }
  0x40   :  { %413 = vmatprep.subr.mxu1 %v160_v16 }
  0x41   :  { %414 = vmatpush3.msra.mxu1 %v160_v16 }
  0x42   :  { %415 = vmatprep.subr.mxu1 %v159_v17 }
  0x43   :  { %416 = vmatpush3.msra.mxu1 %v159_v17 }
  0x44   :  { %417 = vmatprep.subr.mxu1 %v158_v18 }
  0x45   :  { %418 = vmatpush3.msra.mxu1 %v158_v18 }
  0x46   :  { %419 = vmatprep.subr.mxu1 %v157_v19 }
  0x47   :  { %420 = vmatpush3.msra.mxu1 %v157_v19 }
  0xea   :  { %v388_v21 = vpop.f32.mrf.mxu0 }
  0xeb   :  { %v152_v22 = vadd.f32 %v388_v21, %v350_v20 }
  0xec   :  { %v146_v23 = vpop.f32.mrf.mxu0 }
  0xed   :  { %v147_v24 = vadd.f32 %v350_v20, %v146_v23  ;;  %v156_v26 = vmax.f32 %v152_v22, 0.0 }
  0xef   :  { %v155_v25 = vmax.f32 %v147_v24, 0.0 }
  0xf1   :  { %421 = vmatprep.mubr.f32.mxu1 %v155_v25 }
  0xf2   :  { %422 = vmatmul.mubr.f32.vlgmr.msra.gmra.mxu1 %v156_v26 }
 0x1b2   :  { %v423_v27 = vpop.f32.mrf.mxu1 }
 0x1b3   :  { %424 = vmatprep.subr.mxu0 %v423_v27 }
 0x1b4   :  { %v239_v28 = vpop.f32.mrf.mxu1  ;;  %425 = vmatpush3.msra.mxu0 %v423_v27 }
 0x1b5   :  { %426 = vmatprep.subr.mxu0 %v239_v28 }
 0x1b6   :  { %427 = vmatpush3.msra.mxu0 %v239_v28 }
 0x1b7   :  { %429 = vmatmul.mubr.msk.f32.vlgmr.msra.gmra.mxu0 %vm73_vm0, %v578_v5 }
 0x277   :  { %v430_v30 = vpop.f32.mrf.mxu0 }
 0x278   :  { %v327_v31 = vadd.f32 %v430_v30, %v353_v29 }
 0x279   :  { %v321_v32 = vpop.f32.mrf.mxu0 }
 0x27a   :  { %331 = vst [vmem:[#allocation8 + $0x8] sm:$0xff] %v327_v31  ;;  %v322_v33 = vadd.f32 %v353_v29, %v321_v32 }
 0x27c   :  { %330 = vst [vmem:[#allocation8] sm:$0xff] %v322_v33 }
 0x27d   :  { %508 = shalt.err (!%p505_p5)
}
 0x27e   :  { %343 = dma.vmem_to_hbm [thread:$0]  %s338_s11, 256, %s602_s5, [#allocation4], %s525_s23, %s525_s23, %s526_s24  }
 0x27f   :  { %521 = dma.done.wait [#allocation4], 256  }
 0x280   :  { %522 = vsyncadd [#allocation4], 4294967040 }
 0x281   :  { %347 = vsyncpa [#allocation3], 1 }
 0x282   :  { %348 = vsyncpa [#allocation6], 1 }
 0x283   :  { %349 = vsyncpa [#allocation4], 1 }

</bundles_post_ra>
